<compile_context>
chip_gen: v7x
topology: tpu7x:2x2x1
jax: 0.10.0
libtpu: 0.0.40
codegen_flags: <defaults>
</compile_context>

<pallas_src>
import jax
import jax.numpy as jnp
from jax.experimental import pallas as pl
from jax.experimental.pallas import tpu as pltpu

_HIDDEN = 16
_LANES = 128


def _discriminator_kernel(x_ref, w1_ref, b1_ref, w2_ref, b2_ref, out_ref):
    # x tile: (TB, F)  w1: (F, 16)  b1: (1, 16)
    # w2: (16, D)      b2: (1, D)   out tile: (TB, D)
    x = x_ref[...]
    # First matmul on the MXU with f32 accumulation; bias + ReLU stay in the
    # f32 accumulator (do NOT drop to bf16 between the matmuls — v5e has no
    # bf16 VPU path and the (TB,16) intermediate is tiny anyway).
    h = jnp.dot(x, w1_ref[...], preferred_element_type=jnp.float32)
    h = h + b1_ref[...].astype(jnp.float32)
    h = jnp.maximum(h, 0.0)  # ReLU
    o = jnp.dot(h, w2_ref[...].astype(jnp.float32),
                preferred_element_type=jnp.float32)
    o = o + b2_ref[...].astype(jnp.float32)
    out_ref[...] = o.astype(out_ref.dtype)


def _round_up(v: int, m: int) -> int:
    return ((v + m - 1) // m) * m


def _sublane_multiple(dtype) -> int:
    # f32 -> 8, bf16 -> 16, int8/fp8 -> 32 (packed rows travel in pairs/quads).
    return max(8, 32 // jnp.dtype(dtype).itemsize)


def _vmem_capacity_bytes() -> int:
    try:
        return int(pltpu.get_tpu_info().vmem_capacity_bytes)
    except Exception:
        # Conservative fallback = v7x per-TC capacity.
        return 64 << 20


def _derive_block_batch(B, F, x_dtype, w1_dtype, out_dtype,
                        tile_budget_bytes) -> int:
    ix = jnp.dtype(x_dtype).itemsize
    iw1 = jnp.dtype(w1_dtype).itemsize
    io = jnp.dtype(out_dtype).itemsize
    sub = _sublane_multiple(x_dtype)

    # Bytes that scale with TB (per output row):
    #   2 double-buffered x rows of F elements,
    #   2 double-buffered lane-padded output rows (D pads to 128 lanes),
    #   1 lane-padded f32 row for the (TB,16) intermediate h.
    per_row = 2 * F * ix + 2 * _LANES * io + _LANES * 4

    # VMEM-resident bytes independent of TB (weights/biases, lane-padded to
    # 128; Pallas still allocates 2 buffers even at a constant block index).
    f_pad = _round_up(F, 8)
    fixed = (2 * f_pad * _LANES * iw1      # w1 -> (F,128) padded
             + 2 * 8 * _LANES * 4          # b1 -> (8,128) padded
             + 2 * _HIDDEN * _LANES * 4    # w2 -> (16,128) padded
             + 2 * 8 * _LANES * 4)         # b2 -> (8,128) padded

    avail = max(tile_budget_bytes - fixed, per_row * sub)
    tb = avail // per_row
    # Cap: beyond ~2K rows the per-step overhead (~0.35 us) is already well
    # amortized; also never exceed the (sublane-rounded) batch itself.
    tb = min(tb, 2048, _round_up(B, sub))
    tb = max(sub, (tb // sub) * sub)
    return int(tb)


def domain_discriminator(x, w1, b1, w2, b2, *, block_batch=None,
                         vmem_limit_bytes=None):
    """Fused MLP forward: relu(x @ w1 + b1) @ w2 + b2, batch-tiled over a grid."""
    B, F = x.shape
    H, D = w2.shape
    assert w1.shape == (F, H) and b1.shape == (1, H) and b2.shape == (1, D)

    out_dtype = x.dtype

    # Explicit scoped-VMEM budget (the defaults are 16/32 MiB — far below the
    # physical 128 MiB on v5e/v6e).  On v7x (64 MiB per TC) this caps at
    # 48 MiB, leaving headroom so a large-F tile never OOMs or de-pipelines.
    capacity = _vmem_capacity_bytes()
    if vmem_limit_bytes is None:
        vmem_limit_bytes = int(min(capacity * 3 // 4, 96 << 20))
    # Leave headroom inside the scoped limit for compiler-internal scratch.
    tile_budget = max(vmem_limit_bytes - (4 << 20), 2 << 20)

    sub = _sublane_multiple(x.dtype)
    if block_batch is None:
        TB = _derive_block_batch(B, F, x.dtype, w1.dtype, out_dtype, tile_budget)
    else:
        TB = max(sub, _round_up(min(block_batch, _round_up(B, sub)), sub))
    grid = (pl.cdiv(B, TB),)

    itemsize = lambda a: jnp.dtype(a.dtype).itemsize
    flops = 2 * B * F * H + 2 * B * H * D
    bytes_accessed = (B * F * itemsize(x)
                      + B * D * jnp.dtype(out_dtype).itemsize
                      + w1.size * itemsize(w1) + b1.size * itemsize(b1)
                      + w2.size * itemsize(w2) + b2.size * itemsize(b2))
    cost = pl.CostEstimate(flops=flops, transcendentals=0,
                           bytes_accessed=bytes_accessed)

    return pl.pallas_call(
        _discriminator_kernel,
        out_shape=jax.ShapeDtypeStruct((B, D), out_dtype),
        grid=grid,
        in_specs=[
            # x / out tiles march along the batch; weights & biases stay at a
            # constant block index so they remain VMEM-resident across steps.
            # Partial final tile (B % TB != 0): garbage rows flow through the
            # matmuls but their output writes are masked — correct.
            pl.BlockSpec((TB, F), lambda i: (i, 0)),
            pl.BlockSpec((F, H), lambda i: (0, 0)),
            pl.BlockSpec((1, H), lambda i: (0, 0)),
            pl.BlockSpec((H, D), lambda i: (0, 0)),
            pl.BlockSpec((1, D), lambda i: (0, 0)),
        ],
        out_specs=pl.BlockSpec((TB, D), lambda i: (i, 0)),
        compiler_params=pltpu.CompilerParams(
            # Every batch tile is independent (no reduction axis) -> parallel,
            # so v7x can shard tiles across its 2 TensorCores; no-op on v5e/v6e.
            # TODO(synk): if xprof shows one v7x TC idle, switch to
            # (pltpu.CORE_PARALLEL,).
            dimension_semantics=("parallel",),
            vmem_limit_bytes=int(vmem_limit_bytes),
        ),
        cost_estimate=cost,
    )(x, w1, b1, w2, b2)


def init_params(key, feature_dim: int, num_domains: int):
    """Deterministic init matching nn.Linear shapes (weights stored as (in, out))."""
    k1, k2, k3, k4 = jax.random.split(key, 4)
    hidden = _HIDDEN
    # PyTorch nn.Linear default: U(-1/sqrt(fan_in), 1/sqrt(fan_in))
    bound1 = 1.0 / (feature_dim ** 0.5)
    bound2 = 1.0 / (hidden ** 0.5)
    w1 = jax.random.uniform(k1, (feature_dim, hidden), jnp.float32, -bound1, bound1)
    b1 = jax.random.uniform(k2, (1, hidden), jnp.float32, -bound1, bound1)
    w2 = jax.random.uniform(k3, (hidden, num_domains), jnp.float32, -bound2, bound2)
    b2 = jax.random.uniform(k4, (1, num_domains), jnp.float32, -bound2, bound2)
    return w1, b1, w2, b2


if __name__ == "__main__":
    feature_dim = 32
    num_domains = 4
    batch = 8

    key = jax.random.PRNGKey(0)
    kx, kp = jax.random.split(key)
    x = jax.random.normal(kx, (batch, feature_dim), jnp.float32)
    w1, b1, w2, b2 = init_params(kp, feature_dim, num_domains)

    # f32 path — exact match against the plain-JAX reference.
    out = jax.block_until_ready(domain_discriminator(x, w1, b1, w2, b2))
    ref = jnp.maximum(x @ w1 + b1, 0.0) @ w2 + b2
    assert out.shape == (batch, num_domains)
    assert jnp.allclose(out, ref, atol=1e-5, rtol=1e-5)

    # bf16 x / w1 path (halves the dominant HBM read stream; kernel still
    # accumulates in f32).  This is the recommended caller default.
    xb = x.astype(jnp.bfloat16)
    w1b = w1.astype(jnp.bfloat16)
    out_bf16 = jax.block_until_ready(domain_discriminator(xb, w1b, b1, w2, b2))
    ref_bf16 = jnp.maximum(
        xb.astype(jnp.float32) @ w1b.astype(jnp.float32) + b1, 0.0) @ w2 + b2
    assert out_bf16.shape == (batch, num_domains)
    assert jnp.allclose(out_bf16.astype(jnp.float32), ref_bf16,
                        atol=2e-2, rtol=2e-2)

    # Explicit block_batch override path (exercises the user-supplied tiling).
    out2 = jax.block_until_ready(
        domain_discriminator(x, w1, b1, w2, b2, block_batch=8))
    assert jnp.allclose(out2, ref, atol=1e-5, rtol=1e-5)

    print("KERNEL_OK")
</pallas_src>

<mosaic_0001>
module attributes {stable_mosaic.version = 11 : i64} {
  func.func @_discriminator_kernel(%arg0: i32, %arg1: memref<8x32xf32, #tpu.memory_space<vmem>>, %arg2: memref<32x16xf32, #tpu.memory_space<vmem>>, %arg3: memref<1x16xf32, #tpu.memory_space<vmem>>, %arg4: memref<16x4xf32, #tpu.memory_space<vmem>>, %arg5: memref<1x4xf32, #tpu.memory_space<vmem>>, %arg6: memref<8x4xf32, #tpu.memory_space<vmem>>) attributes {dimension_semantics = [#tpu.dimension_semantics<parallel>], iteration_bounds = array<i64: 1>, scalar_prefetch = 0 : i64, scratch_operands = 0 : i64, tpu.core_type = #tpu.core_type<tc>, window_params = [{transform_indices = @transform_0, window_bounds = array<i64: 8, 32>}, {pipeline_mode = #tpu.pipeline_mode<synchronous>, transform_indices = @transform_1, window_bounds = array<i64: 32, 16>}, {pipeline_mode = #tpu.pipeline_mode<synchronous>, transform_indices = @transform_2, window_bounds = array<i64: 1, 16>}, {pipeline_mode = #tpu.pipeline_mode<synchronous>, transform_indices = @transform_3, window_bounds = array<i64: 16, 4>}, {pipeline_mode = #tpu.pipeline_mode<synchronous>, transform_indices = @transform_4, window_bounds = array<i64: 1, 4>}, {transform_indices = @transform_5, window_bounds = array<i64: 8, 4>}]} {
    %c0 = arith.constant 0 : index
    %c0_0 = arith.constant 0 : index
    %0 = vector.load %arg1[%c0, %c0_0] : memref<8x32xf32, #tpu.memory_space<vmem>>, vector<8x32xf32>
    %c0_1 = arith.constant 0 : index
    %c0_2 = arith.constant 0 : index
    %1 = vector.load %arg2[%c0_1, %c0_2] : memref<32x16xf32, #tpu.memory_space<vmem>>, vector<32x16xf32>
    %cst = arith.constant dense<0.000000e+00> : vector<8x16xf32>
    %2 = tpu.matmul %0, %1, %cst {dimension_numbers = #tpu.dot_dimension_numbers<[1], [0], [0], [1], [0, 0, 1, 1], [], []>} : vector<8x32xf32>, vector<32x16xf32>, vector<8x16xf32> -> vector<8x16xf32>
    %c0_3 = arith.constant 0 : index
    %c0_4 = arith.constant 0 : index
    %3 = vector.load %arg3[%c0_3, %c0_4] : memref<1x16xf32, #tpu.memory_space<vmem>>, vector<1x16xf32>
    %4 = vector.broadcast %3 : vector<1x16xf32> to vector<8x16xf32>
    %5 = arith.addf %2, %4 : vector<8x16xf32>
    %cst_5 = arith.constant 0.000000e+00 : f32
    %6 = vector.broadcast %cst_5 : f32 to vector<8x16xf32>
    %7 = arith.maximumf %5, %6 : vector<8x16xf32>
    %c0_6 = arith.constant 0 : index
    %c0_7 = arith.constant 0 : index
    %8 = vector.load %arg4[%c0_6, %c0_7] : memref<16x4xf32, #tpu.memory_space<vmem>>, vector<16x4xf32>
    %cst_8 = arith.constant dense<0.000000e+00> : vector<8x4xf32>
    %9 = tpu.matmul %7, %8, %cst_8 {dimension_numbers = #tpu.dot_dimension_numbers<[1], [0], [0], [1], [0, 0, 1, 1], [], []>} : vector<8x16xf32>, vector<16x4xf32>, vector<8x4xf32> -> vector<8x4xf32>
    %c0_9 = arith.constant 0 : index
    %c0_10 = arith.constant 0 : index
    %10 = vector.load %arg5[%c0_9, %c0_10] : memref<1x4xf32, #tpu.memory_space<vmem>>, vector<1x4xf32>
    %11 = vector.broadcast %10 : vector<1x4xf32> to vector<8x4xf32>
    %12 = arith.addf %9, %11 : vector<8x4xf32>
    %c0_11 = arith.constant 0 : index
    %c0_12 = arith.constant 0 : index
    %13 = vector.load %arg6[%c0_11, %c0_12] : memref<8x4xf32, #tpu.memory_space<vmem>>, vector<8x4xf32>
    tpu.vector_store %arg6[%c0_11, %c0_12], %12 {strides = array<i32>} : memref<8x4xf32, #tpu.memory_space<vmem>>, vector<8x4xf32>,
    return
  }
  func.func @transform_0(%arg0: i32) -> (i32, i32) {
    %c0_i32 = arith.constant 0 : i32
    %c0_i32_0 = arith.constant 0 : i32
    return %arg0, %c0_i32 : i32, i32
  }
  func.func @transform_1(%arg0: i32) -> (i32, i32) {
    %c0_i32 = arith.constant 0 : i32
    %c0_i32_0 = arith.constant 0 : i32
    %c0_i32_1 = arith.constant 0 : i32
    return %c0_i32, %c0_i32_0 : i32, i32
  }
  func.func @transform_2(%arg0: i32) -> (i32, i32) {
    %c0_i32 = arith.constant 0 : i32
    %c0_i32_0 = arith.constant 0 : i32
    %c0_i32_1 = arith.constant 0 : i32
    return %c0_i32, %c0_i32_0 : i32, i32
  }
  func.func @transform_3(%arg0: i32) -> (i32, i32) {
    %c0_i32 = arith.constant 0 : i32
    %c0_i32_0 = arith.constant 0 : i32
    %c0_i32_1 = arith.constant 0 : i32
    return %c0_i32, %c0_i32_0 : i32, i32
  }
  func.func @transform_4(%arg0: i32) -> (i32, i32) {
    %c0_i32 = arith.constant 0 : i32
    %c0_i32_0 = arith.constant 0 : i32
    %c0_i32_1 = arith.constant 0 : i32
    return %c0_i32, %c0_i32_0 : i32, i32
  }
  func.func @transform_5(%arg0: i32) -> (i32, i32) {
    %c0_i32 = arith.constant 0 : i32
    %c0_i32_0 = arith.constant 0 : i32
    return %arg0, %c0_i32 : i32, i32
  }
}

</mosaic_0001>

<bundles_post_ra>
// kernel: tpu_custom_call.1
= control target key start
LH: loop header
LB: loop body
LE: loop exit
PB: predicated region body
PF: predicated region fallthrough
CT: control target
= control target key end

     0   :  { %v238_v0 = vmov 0.0|0.0   ;;  %vm239_vm0 = vmmov 0   ;;  %v240_v4 = vmov 0.0   ;;  %vm32_vm1 = vcmask 261120   ;;  %s301_s1 = inlined_call_operand.vmem [shape: f32[32,16], index: 1, kind: input, shape index: {}]   ;;  %s302_s0 = inlined_call_operand.vmem [shape: f32[8,32], index: 0, kind: input, shape index: {}]   ;;  %s303_s3 = inlined_call_operand.vmem [shape: f32[16,4], index: 3, kind: input, shape index: {}]   ;;  %s304_s2 = inlined_call_operand.vmem [shape: f32[1,16], index: 2, kind: input, shape index: {}]   ;;  %s305_s4 = inlined_call_operand.vmem [shape: f32[1,4], index: 4, kind: input, shape index: {}]   ;;  %s306_s5 = inlined_call_operand.vmem [shape: f32[8,4], index: 5, kind: output, shape index: {}]  }
   0x1   :  { %226 = vmatprep.subr.bf16.mxu0 %v238_v0  ;;  %v21_v1 = vld [vmem:[%s301_s1] sm:$0xff]  ;;  %v22_v2 = vld [vmem:[%s301_s1 + $0x8] sm:$0xff]  ;;  %v23_v3 = vld [vmem:[%s301_s1 + $0x10] sm:$0xff]  ;;  %216 = vmatprep.mubr.msk.f32.mxu0 %vm239_vm0, %v240_v4  ;;  %vm116_vm2 = vcmask 130048   ;;  %vm190_vm3 = vcmask 31744  }
   0x2   :  { %v227_v5 = vpack.c.bf16 %v22_v2, %v21_v1  ;;  %v24_v6 = vld [vmem:[%s301_s1 + $0x18] sm:$0xff]  ;;  %232 = vmatprep.subr.bf16.mxu1 %v238_v0  ;;  %223 = vmatprep.mubr.msk.f32.mxu1 %vm239_vm0, %v240_v4  ;;  %v20_v8 = vld [vmem:[%s302_s0] sm:$0xff]  ;;  %v108_v10 = vld [vmem:[%s303_s3 + $0x8] sm:$0xff] }
   0x3   :  { %v230_v7 = vpack.c.bf16 %v24_v6, %v23_v3  ;;  %v107_v9 = vld [vmem:[%s303_s3] sm:$0xff] }
   0x4   :  { %228 = vmatpush3.bf16.msra.mxu0 %v227_v5  ;;  %v233_v11 = vpack.c.bf16 %v108_v10, %v107_v9  ;;  %v196_v12 = vld [vmem:[%s304_s2] ss:$0 sm:$0xff] }
   0x5   :  { %229 = vmatprep.subr.bf16.mxu0 %v238_v0  ;;  %v198_v17 = vld [vmem:[%s305_s4] ss:$0 sm:$0xff] }
   0x6   :  { %234 = vmatpush3.bf16.msra.mxu1 %v233_v11 }
   0x8   :  { %231 = vmatpush3.bf16.msra.mxu0 %v230_v7 }
   0xb   :  { %217 = vmatmul.mubr.msk.f32.vlgmr.msra.gmra.mrb[0].mxu0 %vm32_vm1, %v20_v8 }
  0xde   :  { %v102_v13 = vpop.f32.mrb[0].mxu0 }
  0xdf   :  { %v103_v14 = vadd.f32 %v196_v12, %v102_v13  ;;  %v218_v15 = vpop.f32.mrb[1].mxu0 }
  0xe1   :  { %v106_v16 = vmax.f32 %v103_v14, 0.0 }
  0xe3   :  { %224 = vmatmul.mubr.msk.f32.vlgmr.msra.gmra.mrb[0].mxu1 %vm116_vm2, %v106_v16 }
 0x1b6   :  { %v186_v18 = vpop.f32.mrb[0].mxu1 }
 0x1b7   :  { %v187_v19 = vadd.f32 %v198_v17, %v186_v18  ;;  %v225_v20 = vpop.f32.mrb[1].mxu1 }
 0x1b9   :  { %191 = vst.msk [vmem:[%s306_s5] sm:$0xff] %vm190_vm3, %v187_v19 }

</bundles_post_ra>
